<compile_context>
chip_gen: v6e
topology: v6e:2x2x1
jax: 0.10.0
libtpu: 0.0.40
codegen_flags: <defaults>
</compile_context>

<pallas_src>
from functools import partial

import jax
import jax.numpy as jnp
from jax import lax
from jax.experimental import pallas as pl
from jax.experimental.pallas import tpu as pltpu

EPS = 1e-12


def _round_up(x, m):
    return ((x + m - 1) // m) * m


def _vmem_limit_bytes():
    """Generation-aware scoped-VMEM cap: ~3/4 of physical VMEM, <= 100 MiB.

    v5e/v6e (128 MiB) -> 96 MiB, v7x (64 MiB) -> 48 MiB.  Falls back to a
    v7x-safe 48 MiB when the hardware query is unavailable.
    """
    try:
        cap = int(pltpu.get_tpu_info().vmem_capacity_bytes)
        return min((cap * 3) // 4, 100 * 1024 * 1024)
    except Exception:
        return 48 * 1024 * 1024


# ----------------------------------------------------------------------------
# Kernel 1: power iteration -> (u, v, 1/sigma).  W_sn is NOT materialized; the
# conv kernel applies 1/sigma in its epilogue instead.
# ----------------------------------------------------------------------------
def _power_iter_kernel(w_hbm_ref, u_ref, u_out_ref, v_out_ref, inv_sigma_ref,
                       w_vmem, copy_sem, *, power_iterations):
    # Single-buffered manual DMA of W.  (A plain BlockSpec would allocate two
    # full (H, K) buffers even with grid=(1,), which can exceed v7x VMEM for
    # large layers, e.g. 1024 x 9216 f32.)
    cp = pltpu.make_async_copy(w_hbm_ref, w_vmem, copy_sem)
    cp.start()
    cp.wait()

    w = w_vmem[...]                                     # (H, K) f32, VMEM resident
    u = u_ref[...]                                      # (H, 1)
    for _ in range(power_iterations):
        # v = l2normalize(W^T u)                        (sublane reduction, XLU)
        wtu = jnp.sum(w * u, axis=0, keepdims=True)     # (1, K)
        v = wtu / (jnp.sqrt(jnp.sum(wtu * wtu, keepdims=True)) + EPS)
        # u = l2normalize(W v)                          (lane reduction)
        wv = jnp.sum(w * v, axis=1, keepdims=True)      # (H, 1)
        ss_u = jnp.sum(wv * wv, keepdims=True)          # (1, 1)
        u_norm = jnp.sqrt(ss_u) + EPS
        u = wv / u_norm
    # sigma = u . (W v) = ||Wv||^2 / (||Wv|| + eps)  since u = wv / u_norm.
    sigma = ss_u / u_norm
    u_out_ref[...] = u
    v_out_ref[...] = v
    inv_sigma_ref[...] = 1.0 / sigma


def spectral_sigma(w_mat, u, power_iterations=1):
    """w_mat: (H, K) f32 (= w_bar.view(Cout, -1)); u: (H,) f32.
    Returns (inv_sigma (1,1) f32, u_new (H,), v_new (K,))."""
    assert power_iterations >= 1  # sigma uses loop-carried values
    H, K = w_mat.shape
    kernel = partial(_power_iter_kernel, power_iterations=power_iterations)
    u_new, v_new, inv_sigma = pl.pallas_call(
        kernel,
        grid=(1,),
        out_shape=(
            jax.ShapeDtypeStruct((H, 1), jnp.float32),
            jax.ShapeDtypeStruct((1, K), jnp.float32),
            jax.ShapeDtypeStruct((1, 1), jnp.float32),
        ),
        in_specs=[
            pl.BlockSpec(memory_space=pl.ANY),            # W stays in HBM
            pl.BlockSpec((H, 1), lambda i: (0, 0)),
        ],
        out_specs=(
            pl.BlockSpec((H, 1), lambda i: (0, 0)),
            pl.BlockSpec((1, K), lambda i: (0, 0)),
            pl.BlockSpec((1, 1), lambda i: (0, 0)),
        ),
        scratch_shapes=[
            pltpu.VMEM((H, K), jnp.float32),              # single W buffer
            pltpu.SemaphoreType.DMA,
        ],
        compiler_params=pltpu.CompilerParams(
            dimension_semantics=("arbitrary",),
            vmem_limit_bytes=_vmem_limit_bytes()),
    )(w_mat.astype(jnp.float32), u.reshape(H, 1).astype(jnp.float32))
    return inv_sigma, u_new.reshape(H), v_new.reshape(K)


# ----------------------------------------------------------------------------
# Kernel 2: fused im2col conv on the MXU, with fused 1/sigma + bias epilogue.
#   out[b, ho*Wo+wo, co] =
#     (sum_{ki,kj,ci} x_pad[b, ho+ki, wo+kj, ci] * W[(ki,kj,ci), co]) / sigma
#     + bias[co]
# ----------------------------------------------------------------------------
def _fused_conv_kernel(inv_sigma_ref, x_ref, w_ref, b_ref, o_ref, *,
                       kh, kw, cin, ho, wo):
    # x_ref: (1, Hp, Wp, Cin)   compute dtype (bf16 by default)
    # w_ref: (K, tn)            compute dtype, K = kh*kw*Cin (tap-major/cin-minor)
    # b_ref: (1, tn) f32;  o_ref: (1, Ho*Wo, tn) f32
    x = x_ref[0]                                    # (Hp, Wp, Cin)
    m = ho * wo
    tn = o_ref.shape[2]
    acc = jnp.zeros((m, tn), jnp.float32)
    # Fused im2col: one (Ho*Wo, Cin) x (Cin, tn) matmul per tap, f32 accumulate.
    # Tap offsets are static Python ints -> static VMEM slices, no HBM patch
    # expansion.  (stride == 1; see wrapper TODO for general stride.)
    for ki in range(kh):
        for kj in range(kw):
            tap = ki * kw + kj
            lhs = x[ki:ki + ho, kj:kj + wo, :].reshape(m, cin)
            rhs = w_ref[tap * cin:(tap + 1) * cin, :]
            acc = acc + jnp.dot(lhs, rhs, preferred_element_type=jnp.float32)
    inv_sigma = inv_sigma_ref[0, 0]                 # SMEM scalar (f32)
    o_ref[0] = (acc * inv_sigma + b_ref[...]).astype(o_ref.dtype)


def conv2d_spectral(x, w_bar, bias, inv_sigma, *, stride=1, padding=1,
                    compute_dtype=jnp.bfloat16, tn=256):
    """x: (N,C,H,W) NCHW; w_bar: (Cout,Cin,kh,kw) OIHW; bias: (Cout,);
    inv_sigma: (1,1) f32.  Computes conv(x, w_bar * inv_sigma) + bias."""
    N, C, H, W = x.shape
    Cout, Cin, kh, kw = w_bar.shape
    assert C == Cin
    # TODO(synk): general stride via strided in-kernel tap slices (pl.ds stride).
    assert stride == 1, "fused im2col path implemented for stride=1"
    Ho = H + 2 * padding - kh + 1
    Wo = W + 2 * padding - kw + 1
    Hp, Wp = H + 2 * padding, W + 2 * padding
    K = kh * kw * Cin
    M_img = Ho * Wo

    # Cast to the MXU operand dtype BEFORE any staging copy; only a thin
    # spatial pad is materialized (no kh*kw expansion).
    x_nhwc = jnp.transpose(x.astype(compute_dtype), (0, 2, 3, 1))
    xp = jnp.pad(x_nhwc, ((0, 0), (padding, padding), (padding, padding), (0, 0)))

    # One-time weight transpose to (K, Cout), tap-major / cin-minor, so the
    # kernel contracts k-major (no per-tile XLU transposes).
    w_kc = jnp.transpose(w_bar, (2, 3, 1, 0)).reshape(K, Cout).astype(compute_dtype)

    # Output-channel tile: lane-dense multiple of 128 (256 matches the v6e/v7x
    # 256-wide MXU), clamped for small Cout; padding sliced off afterwards.
    tn = min(tn, _round_up(Cout, 128))
    Np = _round_up(Cout, tn)
    w_p = jnp.pad(w_kc, ((0, 0), (0, Np - Cout)))
    bias_p = jnp.pad(bias.astype(jnp.float32), (0, Np - Cout)).reshape(1, Np)

    kernel = partial(_fused_conv_kernel, kh=kh, kw=kw, cin=Cin, ho=Ho, wo=Wo)

    # Grid: (batch, Cout tiles), both parallel (v7x megacore).  Batch is the
    # outer axis so each padded image is DMA'd exactly once.
    # TODO(synk): halo-tile Ho when N * Np/tn < 2 or when the per-image
    # accumulator would not fit VMEM (very large feature maps).
    out = pl.pallas_call(
        kernel,
        grid=(N, Np // tn),
        out_shape=jax.ShapeDtypeStruct((N, M_img, Np), jnp.float32),
        in_specs=[
            pl.BlockSpec(memory_space=pltpu.MemorySpace.SMEM),      # inv_sigma (1,1)
            pl.BlockSpec((1, Hp, Wp, Cin), lambda b, j: (b, 0, 0, 0)),
            pl.BlockSpec((K, tn), lambda b, j: (0, j)),
            pl.BlockSpec((1, tn), lambda b, j: (0, j)),
        ],
        out_specs=pl.BlockSpec((1, M_img, tn), lambda b, j: (b, 0, j)),
        compiler_params=pltpu.CompilerParams(
            dimension_semantics=("parallel", "parallel"),
            vmem_limit_bytes=_vmem_limit_bytes()),
    )(inv_sigma, xp, w_p, bias_p)

    y_nhwc = out[:, :, :Cout].reshape(N, Ho, Wo, Cout)
    # TODO(synk): keep activations NHWC end-to-end to drop this transpose.
    return jnp.transpose(y_nhwc, (0, 3, 1, 2))                      # back to NCHW


# ----------------------------------------------------------------------------
# SpectralNorm(Conv2d) forward
# ----------------------------------------------------------------------------
def spectral_norm_conv_forward(x, w_bar, bias, u, power_iterations=1,
                               stride=1, padding=1,
                               compute_dtype=jnp.bfloat16):
    Cout = w_bar.shape[0]
    w_mat = w_bar.reshape(Cout, -1)                 # PyTorch w.view(height, -1)
    inv_sigma, u_new, v_new = spectral_sigma(w_mat, u, power_iterations)
    y = conv2d_spectral(x, w_bar, bias, inv_sigma, stride=stride,
                        padding=padding, compute_dtype=compute_dtype)
    return y, u_new, v_new


def _l2normalize(v, eps=EPS):
    return v / (jnp.linalg.norm(v) + eps)


if __name__ == "__main__":
    key = jax.random.PRNGKey(0)
    kx, kw_key, kb, ku = jax.random.split(key, 4)

    N, Cin, H, W = 2, 4, 16, 16
    Cout, kh, kw = 8, 3, 3

    x = jax.random.normal(kx, (N, Cin, H, W), dtype=jnp.float32)
    w_bar = 0.1 * jax.random.normal(kw_key, (Cout, Cin, kh, kw), dtype=jnp.float32)
    bias = 0.1 * jax.random.normal(kb, (Cout,), dtype=jnp.float32)
    u0 = _l2normalize(jax.random.normal(ku, (Cout,), dtype=jnp.float32))

    # Default path: bf16 MXU operands, f32 accumulation / epilogue.
    y, u_new, v_new = spectral_norm_conv_forward(x, w_bar, bias, u0,
                                                 power_iterations=1)
    jax.block_until_ready(y)

    # ---- pure-JAX reference (same math as the PyTorch module) --------------
    w_mat = w_bar.reshape(Cout, -1)
    v_r = _l2normalize(w_mat.T @ u0)
    u_r = _l2normalize(w_mat @ v_r)
    sigma = u_r @ (w_mat @ v_r)
    w_sn_ref = w_bar / sigma
    y_ref = lax.conv_general_dilated(
        x, w_sn_ref, window_strides=(1, 1), padding=[(1, 1), (1, 1)],
        dimension_numbers=("NCHW", "OIHW", "NCHW"),
    ) + bias.reshape(1, Cout, 1, 1)

    assert y.shape == (N, Cout, H, W)
    assert jnp.allclose(y, y_ref, atol=5e-2, rtol=5e-2)       # bf16 operands
    assert jnp.allclose(u_new, u_r, atol=1e-5)                # u/v always f32
    assert jnp.allclose(v_new, v_r, atol=1e-5)

    # f32 operand path — tight check against the reference.
    y32, _, _ = spectral_norm_conv_forward(x, w_bar, bias, u0,
                                           power_iterations=1,
                                           compute_dtype=jnp.float32)
    jax.block_until_ready(y32)
    assert jnp.allclose(y32, y_ref, atol=1e-4, rtol=1e-4)

    print("KERNEL_OK")
</pallas_src>

<mosaic_0001>
module attributes {stable_mosaic.version = 11 : i64} {
  func.func @_power_iter_kernel(%arg0: i32, %arg1: memref<8x36xf32, #tpu.memory_space<any>>, %arg2: memref<8x1xf32, #tpu.memory_space<vmem>>, %arg3: memref<8x1xf32, #tpu.memory_space<vmem>>, %arg4: memref<1x36xf32, #tpu.memory_space<vmem>>, %arg5: memref<1x1xf32, #tpu.memory_space<vmem>>, %arg6: memref<8x36xf32, #tpu.memory_space<vmem>>, %arg7: memref<!tpu.dma_semaphore, #tpu.memory_space<semaphore_mem>>) attributes {dimension_semantics = [#tpu.dimension_semantics<arbitrary>], iteration_bounds = array<i64: 1>, scalar_prefetch = 0 : i64, scratch_operands = 2 : i64, tpu.core_type = #tpu.core_type<tc>, window_params = [{}, {pipeline_mode = #tpu.pipeline_mode<synchronous>, transform_indices = @transform_1, window_bounds = array<i64: 8, 1>}, {pipeline_mode = #tpu.pipeline_mode<synchronous>, transform_indices = @transform_2, window_bounds = array<i64: 8, 1>}, {pipeline_mode = #tpu.pipeline_mode<synchronous>, transform_indices = @transform_3, window_bounds = array<i64: 1, 36>}, {pipeline_mode = #tpu.pipeline_mode<synchronous>, transform_indices = @transform_4, window_bounds = array<i64: 1, 1>}]} {
    tpu.enqueue_dma source(%arg1 : memref<8x36xf32, #tpu.memory_space<any>>) target(%arg6 : memref<8x36xf32, #tpu.memory_space<vmem>>) target_semaphore(%arg7 : memref<!tpu.dma_semaphore, #tpu.memory_space<semaphore_mem>>)
    tpu.wait_dma2 semaphore(%arg7 : memref<!tpu.dma_semaphore, #tpu.memory_space<semaphore_mem>>) src(%arg1 : memref<8x36xf32, #tpu.memory_space<any>>) dst(%arg6 : memref<8x36xf32, #tpu.memory_space<vmem>>)
    %c0 = arith.constant 0 : index
    %c0_0 = arith.constant 0 : index
    %0 = vector.load %arg6[%c0, %c0_0] : memref<8x36xf32, #tpu.memory_space<vmem>>, vector<8x36xf32>
    %c0_1 = arith.constant 0 : index
    %c0_2 = arith.constant 0 : index
    %1 = vector.load %arg2[%c0_1, %c0_2] : memref<8x1xf32, #tpu.memory_space<vmem>>, vector<8x1xf32>
    %2 = vector.broadcast %1 : vector<8x1xf32> to vector<8x36xf32>
    %3 = arith.mulf %0, %2 : vector<8x36xf32>
    %cst = arith.constant dense<0.000000e+00> : vector<36xf32>
    %4 = vector.multi_reduction <add>, %3, %cst [0] : vector<8x36xf32> to vector<36xf32>
    %5 = vector.shape_cast %4 : vector<36xf32> to vector<1x36xf32>
    %6 = arith.mulf %5, %5 : vector<1x36xf32>
    %7 = vector.shape_cast %6 : vector<1x36xf32> to vector<1x1x36xf32>
    %cst_3 = arith.constant dense<0.000000e+00> : vector<1xf32>
    %8 = vector.multi_reduction <add>, %7, %cst_3 [1, 2] : vector<1x1x36xf32> to vector<1xf32>
    %9 = vector.shape_cast %8 : vector<1xf32> to vector<1x1x1xf32>
    %10 = vector.extract %9[0, 0, 0] : f32 from vector<1x1x1xf32>
    %11 = vector.broadcast %10 : f32 to vector<1x1xf32>
    %12 = math.sqrt %11 : vector<1x1xf32>
    %cst_4 = arith.constant 9.99999996E-13 : f32
    %13 = vector.broadcast %cst_4 : f32 to vector<1x1xf32>
    %14 = arith.addf %12, %13 : vector<1x1xf32>
    %15 = vector.broadcast %14 : vector<1x1xf32> to vector<1x36xf32>
    %16 = arith.divf %5, %15 : vector<1x36xf32>
    %17 = vector.broadcast %16 : vector<1x36xf32> to vector<8x36xf32>
    %18 = arith.mulf %0, %17 : vector<8x36xf32>
    %cst_5 = arith.constant dense<0.000000e+00> : vector<8xf32>
    %19 = vector.multi_reduction <add>, %18, %cst_5 [1] : vector<8x36xf32> to vector<8xf32>
    %20 = vector.shape_cast %19 : vector<8xf32> to vector<8x1xf32>
    %21 = arith.mulf %20, %20 : vector<8x1xf32>
    %22 = vector.shape_cast %21 : vector<8x1xf32> to vector<1x8x1xf32>
    %cst_6 = arith.constant dense<0.000000e+00> : vector<1xf32>
    %23 = vector.multi_reduction <add>, %22, %cst_6 [1, 2] : vector<1x8x1xf32> to vector<1xf32>
    %24 = vector.shape_cast %23 : vector<1xf32> to vector<1x1x1xf32>
    %25 = vector.extract %24[0, 0, 0] : f32 from vector<1x1x1xf32>
    %26 = vector.broadcast %25 : f32 to vector<1x1xf32>
    %27 = math.sqrt %26 : vector<1x1xf32>
    %cst_7 = arith.constant 9.99999996E-13 : f32
    %28 = vector.broadcast %cst_7 : f32 to vector<1x1xf32>
    %29 = arith.addf %27, %28 : vector<1x1xf32>
    %30 = vector.broadcast %29 : vector<1x1xf32> to vector<8x1xf32>
    %31 = arith.divf %20, %30 : vector<8x1xf32>
    %32 = arith.divf %26, %29 : vector<1x1xf32>
    %c0_8 = arith.constant 0 : index
    %c0_9 = arith.constant 0 : index
    %33 = vector.load %arg3[%c0_8, %c0_9] : memref<8x1xf32, #tpu.memory_space<vmem>>, vector<8x1xf32>
    tpu.vector_store %arg3[%c0_8, %c0_9], %31 {strides = array<i32>} : memref<8x1xf32, #tpu.memory_space<vmem>>, vector<8x1xf32>,
    %c0_10 = arith.constant 0 : index
    %c0_11 = arith.constant 0 : index
    %34 = vector.load %arg4[%c0_10, %c0_11] : memref<1x36xf32, #tpu.memory_space<vmem>>, vector<1x36xf32>
    tpu.vector_store %arg4[%c0_10, %c0_11], %16 {strides = array<i32>} : memref<1x36xf32, #tpu.memory_space<vmem>>, vector<1x36xf32>,
    %cst_12 = arith.constant 1.000000e+00 : f32
    %35 = vector.broadcast %cst_12 : f32 to vector<1x1xf32>
    %36 = arith.divf %35, %32 : vector<1x1xf32>
    %c0_13 = arith.constant 0 : index
    %c0_14 = arith.constant 0 : index
    %37 = vector.load %arg5[%c0_13, %c0_14] : memref<1x1xf32, #tpu.memory_space<vmem>>, vector<1x1xf32>
    tpu.vector_store %arg5[%c0_13, %c0_14], %36 {strides = array<i32>} : memref<1x1xf32, #tpu.memory_space<vmem>>, vector<1x1xf32>,
    return
  }
  func.func @transform_1(%arg0: i32) -> (i32, i32) {
    %c0_i32 = arith.constant 0 : i32
    %c0_i32_0 = arith.constant 0 : i32
    %c0_i32_1 = arith.constant 0 : i32
    return %c0_i32, %c0_i32_0 : i32, i32
  }
  func.func @transform_2(%arg0: i32) -> (i32, i32) {
    %c0_i32 = arith.constant 0 : i32
    %c0_i32_0 = arith.constant 0 : i32
    %c0_i32_1 = arith.constant 0 : i32
    return %c0_i32, %c0_i32_0 : i32, i32
  }
  func.func @transform_3(%arg0: i32) -> (i32, i32) {
    %c0_i32 = arith.constant 0 : i32
    %c0_i32_0 = arith.constant 0 : i32
    %c0_i32_1 = arith.constant 0 : i32
    return %c0_i32, %c0_i32_0 : i32, i32
  }
  func.func @transform_4(%arg0: i32) -> (i32, i32) {
    %c0_i32 = arith.constant 0 : i32
    %c0_i32_0 = arith.constant 0 : i32
    %c0_i32_1 = arith.constant 0 : i32
    return %c0_i32, %c0_i32_0 : i32, i32
  }
}

</mosaic_0001>

<bundles_post_ra>
// kernel: tpu_custom_call.1
= control target key start
LH: loop header
LB: loop body
LE: loop exit
PB: predicated region body
PF: predicated region fallthrough
CT: control target
= control target key end

     0   :  { %10 = vsyncpa [#allocation5], 0  ;;  %s293_s0 = inlined_call_operand.vmem [shape: f32[8,36], index: 0, kind: input, shape index: {}]   ;;  %s294_s1 = inlined_call_operand.vmem [shape: f32[8,1], index: 1, kind: input, shape index: {}]   ;;  %s295_s2 = inlined_call_operand.vmem [shape: f32[8,1], index: 2, kind: output, shape index: {0}]   ;;  %s296_s3 = inlined_call_operand.hbm [shape: f32[1,36], index: 3, kind: output, shape index: {1}]   ;;  %s297_s4 = inlined_call_operand.hbm [shape: f32[1,1], index: 4, kind: output, shape index: {2}]  }
   0x1   :  { %11 = vsyncpa [#allocation7], 0  ;;  %v47_v0 = vld [vmem:[%s293_s0] sm:$0xff] }
   0x2   :  { %56 = vsyncadd [#allocation3], 128 }
   0x3   :  { %238 = dma.done.wait [#allocation3], 128 }
   0x4   :  { %239 = vsyncadd [#allocation3], 4294967168  ;;  %v244_v1 = vmov 0   ;;  %v61_v2 = vld [vmem:[%s294_s1] sm:$0xff]  ;;  %vm68_vm0 = vcmask 293888   ;;  %vm77_vm1 = vcmask 286720  }
   0x5   :  { %187 = vset.pattern.permute.xlu0 %v244_v1  ;;  %vm104_vm4 = vcmask 7168   ;;  %s245_s1 = smov [#allocation4]  }
   0x6   :  { %64 = vperm.xlu0 %187, %v61_v2   ;;  %s141_s19 = sshll.u32 %s245_s1, 4  ;;  %s142_s19 = int_to_ptr.vmem [resolvable:$true] %s141_s19 }
   0x7   :  { %s198_s20 = scalar_lea.vmem %s142_s19, 16  ;;  %s202_s21 = scalar_lea.vmem %s142_s19, 32 }
   0x8   :  { %p199_p0 = scmp.ne.s32.totalorder %s142_s19, %s198_s20  ;;  %p203_p1 = scmp.lt.s32.totalorder %s142_s19, %s142_s19 }
   0x9   :  { %p204_p2 = scmp.lt.s32.totalorder %s202_s21, %s198_s20 }
   0xb   :  { %p205_p3 = por %p204_p2, %p203_p1 }
   0xd   :  { %p206_p4 = pnand %p205_p3, %p199_p0 }
  0x81   :  { %v65_v3 = vpop.permute.xlu0 %64 }
  0x82   :  { %v67_v4 = vmul.f32 %v65_v3, %v47_v0 }
  0x84   :  { %v69_v5 = vsel %vm68_vm0, %v67_v4, 0.0 }
  0x85   :  { %v70_v6 = vrot.slane %v69_v5, 4 }
  0x87   :  { %v71_v7 = vadd.f32 %v70_v6, %v69_v5 }
  0x89   :  { %v72_v8 = vrot.slane %v71_v7, 2 }
  0x8b   :  { %v73_v9 = vadd.f32 %v72_v8, %v71_v7 }
  0x8d   :  { %v74_v10 = vrot.slane %v73_v9, 1 }
  0x8f   :  { %v75_v11 = vadd.f32 %v74_v10, %v73_v9 }
  0x91   :  { %v76_v12 = vmul.f32 %v75_v11, %v75_v11 }
  0x93   :  { %v78_v13 = vsel %vm77_vm1, %v76_v12, 0.0 }
  0x94   :  { %79 = vadd.xlane.f32.xlu0 %v78_v13 }
 0x11d   :  { %v80_v14 = vpop.xlane.xlu0 %79 }
 0x11e   :  { %v81_v15 = vrot.slane %v80_v14, 4 }
 0x120   :  { %v82_v16 = vadd.f32 %v81_v15, %v80_v14 }
 0x122   :  { %v83_v17 = vrot.slane %v82_v16, 2 }
 0x124   :  { %v84_v18 = vadd.f32 %v83_v17, %v82_v16 }
 0x126   :  { %v85_v19 = vrot.slane %v84_v18, 1 }
 0x128   :  { %v86_v20 = vadd.f32 %v85_v19, %v84_v18 }
 0x12a   :  { %180 = vpush %v86_v20 }
 0x15b   :  { %s181_s0 = spop %180 }
 0x15c   :  { %v88_v21 = vstv %s181_s0 }
 0x15d   :  { %188 = vrsqrt.f32 %v88_v21  ;;  %vm91_vm2 = vcmp.eq.f32.partialorder %v88_v21, inf  ;;  %v94_v24 = vand.u32 2147483648, %v88_v21  ;;  %vm93_vm3 = vcmp.eq.f32.partialorder %v88_v21, 0.0 }
 0x16a   :  { %v189_v22 = vpop.eup %188 }
 0x16b   :  { %v90_v23 = vmul.f32 %v189_v22, %v88_v21 }
 0x16d   :  { %v92_v25 = vsel %vm91_vm2, %v88_v21, %v90_v23 }
 0x16e   :  { %v95_v26 = vsel %vm93_vm3, %v94_v24, %v92_v25 }
 0x16f   :  { %v96_v27 = vadd.f32 1e-12, %v95_v26 }
 0x171   :  { %190 = vrcp.f32 %v96_v27 }
 0x17e   :  { %v191_v28 = vpop.eup %190 }
 0x17f   :  { %v98_v29 = vmul.f32 %v191_v28, %v75_v11 }
 0x181   :  { %v99_v30 = vmul.f32 %v98_v29, %v47_v0  ;;  %128 = vst.msk [vmem:[#allocation4] sm:$0x1] %vm77_vm1, %v98_v29 }
 0x183   :  { %v100_v31 = vsel %vm68_vm0, %v99_v30, 0.0 }
 0x184   :  { %101 = vadd.xlane.f32.xlu1 %v100_v31 }
 0x20d   :  { %v102_v32 = vpop.xlane.xlu1 %101 }
 0x20e   :  { %v103_v33 = vmul.f32 %v102_v32, %v102_v32 }
 0x210   :  { %v105_v34 = vsel %vm104_vm4, %v103_v33, 0.0 }
 0x211   :  { %106 = vadd.xlane.f32.xlu1 %v105_v34 }
 0x212   :  { %209 = shalt.err (!%p206_p4)
}
 0x213   :  { %144 = dma.vmem_to_hbm [thread:$0]  %s142_s19, 16, %s296_s3, [#allocation5]   ;;  %vm131_vm7 = vcmask 0  }
 0x214   :  { %s246_s26 = smov [#allocation6]  }
 0x215   :  { %s151_s27 = sshll.u32 %s246_s26, 4  ;;  %s152_s27 = int_to_ptr.vmem [resolvable:$true] %s151_s27 }
 0x216   :  { %s218_s28 = scalar_lea.vmem %s152_s27, 16  ;;  %s222_s29 = scalar_lea.vmem %s152_s27, 32 }
 0x217   :  { %p219_p5 = scmp.ne.s32.totalorder %s152_s27, %s218_s28  ;;  %p223_p6 = scmp.lt.s32.totalorder %s152_s27, %s152_s27 }
 0x218   :  { %p224_p7 = scmp.lt.s32.totalorder %s222_s29, %s218_s28 }
 0x21a   :  { %p225_p8 = por %p224_p7, %p223_p6 }
 0x21c   :  { %p226_p9 = pnand %p225_p8, %p219_p5 }
 0x29a   :  { %v107_v35 = vpop.xlane.xlu1 %106 }
 0x29b   :  { %v108_v36 = vrot.slane %v107_v35, 4 }
 0x29d   :  { %v109_v37 = vadd.f32 %v108_v36, %v107_v35 }
 0x29f   :  { %v110_v38 = vrot.slane %v109_v37, 2 }
 0x2a1   :  { %v111_v39 = vadd.f32 %v110_v38, %v109_v37 }
 0x2a3   :  { %v112_v40 = vrot.slane %v111_v39, 1 }
 0x2a5   :  { %v113_v41 = vadd.f32 %v112_v40, %v111_v39 }
 0x2a7   :  { %182 = vpush %v113_v41 }
 0x2d8   :  { %s183_s24 = spop %182 }
 0x2d9   :  { %v115_v42 = vstv %s183_s24 }
 0x2da   :  { %192 = vrsqrt.f32 %v115_v42  ;;  %vm118_vm5 = vcmp.eq.f32.partialorder %v115_v42, inf  ;;  %v121_v45 = vand.u32 2147483648, %v115_v42  ;;  %vm120_vm6 = vcmp.eq.f32.partialorder %v115_v42, 0.0 }
 0x2e7   :  { %v193_v43 = vpop.eup %192 }
 0x2e8   :  { %v117_v44 = vmul.f32 %v193_v43, %v115_v42 }
 0x2ea   :  { %v119_v46 = vsel %vm118_vm5, %v115_v42, %v117_v44 }
 0x2eb   :  { %v122_v47 = vsel %vm120_vm6, %v121_v45, %v119_v46 }
 0x2ec   :  { %v123_v48 = vadd.f32 1e-12, %v122_v47 }
 0x2ee   :  { %194 = vrcp.f32 %v123_v48 }
 0x2fb   :  { %v195_v49 = vpop.eup %194 }
 0x2fc   :  { %v125_v50 = vmul.f32 %v195_v49, %v102_v32  ;;  %v126_v51 = vmul.f32 %v195_v49, %v115_v42 }
 0x2fe   :  { %127 = vst.msk [vmem:[%s295_s2] sm:$0xff] %vm104_vm4, %v125_v50  ;;  %196 = vrcp.f32 %v126_v51 }
 0x30b   :  { %v197_v52 = vpop.eup %196 }
 0x30c   :  { %132 = vst.msk [vmem:[#allocation6] sm:$0x1] %vm131_vm7, %v197_v52 }
 0x30d   :  { %229 = shalt.err (!%p226_p9)
}
 0x30e   :  { %154 = dma.vmem_to_hbm [thread:$0]  %s152_s27, 16, %s297_s4, [#allocation7]  }
 0x30f   :  { %240 = dma.done.wait [#allocation5], 16  }
 0x310   :  { %241 = vsyncadd [#allocation5], 4294967280 }
 0x311   :  { %242 = dma.done.wait [#allocation7], 16  }
 0x312   :  { %243 = vsyncadd [#allocation7], 4294967280 }
 0x313   :  { %163 = vsyncpa [#allocation5], 1 }
 0x314   :  { %164 = vsyncpa [#allocation7], 1 }
 0x315   :  { %165 = vsyncmov [#allocation3] }
 0x318   :  { %s166_s2 = vpop.sfrf %165 }
 0x319   :  { %p179_p10 = scmp.ne.s32.totalorder %s166_s2, 0 }
 0x31b   :  { %170 = shalt.err (%p179_p10)  }

</bundles_post_ra>
